<compile_context>
chip_gen: v5e
topology: v5e:2x2
jax: 0.10.0
libtpu: 0.0.40
codegen_flags: <defaults>
</compile_context>

<pallas_src>
import functools

import jax
import jax.numpy as jnp
from jax import lax
from jax.experimental import pallas as pl
from jax.experimental.pallas import tpu as pltpu


def _graph_loss_kernel(adj_ref, x_ref, out_ref, *, c_smooth, c_conn, c_spars,
                       batch, tb):
    """Partial sum of the per-graph loss over one block of TB batch rows."""
    blk = pl.program_id(0)

    adj = adj_ref[...].astype(jnp.float32)          # (TB, N, N)
    x = x_ref[...].astype(jnp.float32)              # (TB, N, D)

    # Row / column sums of adj and squared node norms (per batch element).
    row_sum = jnp.sum(adj, axis=2)                  # (TB, N)  sum_j adj[:, i, j]
    col_sum = jnp.sum(adj, axis=1)                  # (TB, N)  sum_i adj[:, i, j]
    sq = jnp.sum(x * x, axis=2)                     # (TB, N)  ||x_i||^2

    # adj @ x on the MXU: bf16 inputs, f32 accumulation (batched contraction).
    ax = lax.dot_general(
        adj.astype(jnp.bfloat16), x.astype(jnp.bfloat16),
        dimension_numbers=(((2,), (1,)), ((0,), (0,))),
        preferred_element_type=jnp.float32)         # (TB, N, D)
    cross = jnp.sum(x * ax, axis=2)                 # (TB, N)  x_i . (adj x)_i

    # sum_ij ||xi - xj||^2 * adj_ij via the rank-1 folding (no NxN tensor).
    smooth_sum = jnp.sum(sq * (row_sum + col_sum) - 2.0 * cross,
                         axis=1, keepdims=True)     # (TB, 1)

    # connectivity: -mean_j log(sum_i adj_ij); the -1/n lives in c_conn.
    log_sum = jnp.sum(jnp.log(col_sum), axis=1, keepdims=True)       # (TB, 1)

    # sparsity: ||adj||_F per batch; the 1/n^2 lives in c_spars.
    frob2 = jnp.sum(jnp.sum(adj * adj, axis=2), axis=1, keepdims=True)
    frob = jnp.sqrt(frob2)                          # (TB, 1)

    g = c_smooth * smooth_sum + c_conn * log_sum + c_spars * frob     # (TB, 1)

    # Mask out padded batch rows (B was padded up to a multiple of TB).
    b_idx = blk * tb + lax.broadcasted_iota(jnp.int32, (tb, 1), 0)
    g = jnp.where(b_idx < batch, g, 0.0)

    # Lane-dense per-block partial sum; no cross-step accumulator, so the
    # batch grid axis remains "parallel".
    out_ref[...] = jnp.sum(g) + jnp.zeros((1, 1, 128), jnp.float32)


def _pick_batch_block(batch, n, d, dtype_bytes):
    """Largest batch block whose double-buffered inputs + f32/bf16 kernel
    temporaries fit conservative scoped VMEM (v5e default 16 MiB is tightest).
    Prefers a divisor of B (no HBM padding copy) unless that halves the block.
    """
    per_batch = (2 * dtype_bytes + 4 + 2) * (n * n + n * d) + 4 * n * d
    budget = 10 * 1024 * 1024
    tb = int(max(1, min(batch, budget // max(per_batch, 1), 128)))
    for cand in range(tb, 0, -1):                   # largest divisor of B <= tb
        if batch % cand == 0:
            if cand * 2 >= tb:
                return cand
            break
    return tb


def graph_loss(predictions, adj_matrix, labels, inputs,
               alpha=1.0, beta=1.0, gamma=1.0):
    B, n, _ = adj_matrix.shape
    d = inputs.shape[-1]

    # ---- base loss: self.base is an injected criterion; instantiated here as
    # nn.MSELoss() on the flattened predictions / labels.  A trivial fused
    # reduction, so it is computed with plain jnp outside the Pallas pipeline.
    pred = predictions.reshape(-1).astype(jnp.float32)
    lbl = labels.reshape(-1).astype(jnp.float32)
    base_loss = jnp.mean((pred - lbl) ** 2)

    tb = _pick_batch_block(B, n, d, adj_matrix.dtype.itemsize)
    num_blocks = -(-B // tb)                        # cdiv
    b_pad = num_blocks * tb

    adj = adj_matrix                                # keep caller dtype in HBM
    x = inputs
    if b_pad != B:
        # Pad with a "safe" graph (adj = 1 keeps log() finite); the padded
        # batch rows are masked out inside the kernel.
        adj = jnp.concatenate(
            [adj, jnp.ones((b_pad - B, n, n), adj.dtype)], axis=0)
        x = jnp.concatenate(
            [x, jnp.zeros((b_pad - B, n, d), x.dtype)], axis=0)

    kernel = functools.partial(
        _graph_loss_kernel,
        c_smooth=float(alpha) / (2.0 * n * n),      # mean over NxN, then /2
        c_conn=-float(beta) / float(n),             # -mean_j log(col_sum)
        c_spars=float(gamma) / float(n * n),        # ||adj||_F / n^2
        batch=int(B), tb=int(tb))

    partials = pl.pallas_call(
        kernel,
        out_shape=jax.ShapeDtypeStruct((num_blocks, 1, 128), jnp.float32),
        grid_spec=pltpu.PrefetchScalarGridSpec(
            num_scalar_prefetch=0,
            grid=(num_blocks,),
            in_specs=[
                pl.BlockSpec((tb, n, n), lambda i: (i, 0, 0)),
                pl.BlockSpec((tb, n, d), lambda i: (i, 0, 0)),
            ],
            out_specs=pl.BlockSpec((1, 1, 128), lambda i: (i, 0, 0)),
        ),
        compiler_params=pltpu.CompilerParams(
            dimension_semantics=("parallel",)),
    )(adj, x)

    graph_mean = jnp.sum(partials[:, 0, 0]) / float(B)
    return base_loss + graph_mean


def graph_loss_ref(predictions, adj_matrix, labels, inputs,
                   alpha=1.0, beta=1.0, gamma=1.0):
    """Pure-JAX reference mirroring the PyTorch forward (base = MSE)."""
    p = predictions.reshape(-1).astype(jnp.float32)
    l = labels.reshape(-1).astype(jnp.float32)
    adj = adj_matrix.astype(jnp.float32)
    x = inputs.astype(jnp.float32)
    n = adj.shape[2]
    base = jnp.mean((p - l) ** 2)
    sq = jnp.sum(x * x, axis=-1)
    d2 = jnp.maximum(sq[:, :, None] + sq[:, None, :]
                     - 2.0 * jnp.einsum('bnd,bmd->bnm', x, x), 0.0)
    smooth = jnp.mean(d2 * adj, axis=(1, 2)) / 2.0
    conn = -jnp.mean(jnp.log(jnp.sum(adj, axis=1)), axis=1)
    spars = jnp.sqrt(jnp.sum(adj * adj, axis=(1, 2))) / (n * n)
    g = alpha * smooth + beta * conn + gamma * spars
    return base + jnp.mean(g)


if __name__ == "__main__":
    B, N, D = 2, 16, 32
    key = jax.random.PRNGKey(0)
    k1, k2, k3, k4 = jax.random.split(key, 4)

    adj = jax.random.uniform(k1, (B, N, N), minval=0.1, maxval=1.0,
                             dtype=jnp.float32)
    inputs = jax.random.normal(k2, (B, N, D), dtype=jnp.float32)
    predictions = jax.random.normal(k3, (B, N), dtype=jnp.float32)
    labels = jax.random.normal(k4, (B, N), dtype=jnp.float32)

    out = graph_loss(predictions, adj, labels, inputs)
    out = jax.block_until_ready(out)

    ref = graph_loss_ref(predictions, adj, labels, inputs)
    assert jnp.allclose(out, ref, rtol=1e-3, atol=1e-3), (out, ref)

    print("KERNEL_OK")
</pallas_src>

<mosaic_0001>
module attributes {stable_mosaic.version = 11 : i64} {
  func.func @_graph_loss_kernel(%arg0: i32, %arg1: memref<2x16x16xf32, #tpu.memory_space<vmem>>, %arg2: memref<2x16x32xf32, #tpu.memory_space<vmem>>, %arg3: memref<1x1x128xf32, #tpu.memory_space<vmem>>) attributes {dimension_semantics = [#tpu.dimension_semantics<parallel>], iteration_bounds = array<i64: 1>, scalar_prefetch = 0 : i64, scratch_operands = 0 : i64, tpu.core_type = #tpu.core_type<tc>, window_params = [{transform_indices = @transform_0, window_bounds = array<i64: 2, 16, 16>}, {transform_indices = @transform_1, window_bounds = array<i64: 2, 16, 32>}, {transform_indices = @transform_2, window_bounds = array<i64: 1, 1, 128>}]} {
    %c0 = arith.constant 0 : index
    %c0_0 = arith.constant 0 : index
    %c0_1 = arith.constant 0 : index
    %0 = vector.load %arg1[%c0, %c0_0, %c0_1] : memref<2x16x16xf32, #tpu.memory_space<vmem>>, vector<2x16x16xf32>
    %c0_2 = arith.constant 0 : index
    %c0_3 = arith.constant 0 : index
    %c0_4 = arith.constant 0 : index
    %1 = vector.load %arg2[%c0_2, %c0_3, %c0_4] : memref<2x16x32xf32, #tpu.memory_space<vmem>>, vector<2x16x32xf32>
    %cst = arith.constant dense<0.000000e+00> : vector<2x16xf32>
    %2 = vector.multi_reduction <add>, %0, %cst [2] : vector<2x16x16xf32> to vector<2x16xf32>
    %cst_5 = arith.constant dense<0.000000e+00> : vector<2x16xf32>
    %3 = vector.multi_reduction <add>, %0, %cst_5 [1] : vector<2x16x16xf32> to vector<2x16xf32>
    %4 = arith.mulf %1, %1 : vector<2x16x32xf32>
    %cst_6 = arith.constant dense<0.000000e+00> : vector<2x16xf32>
    %5 = vector.multi_reduction <add>, %4, %cst_6 [2] : vector<2x16x32xf32> to vector<2x16xf32>
    %6 = arith.truncf %0 : vector<2x16x16xf32> to vector<2x16x16xbf16>
    %7 = arith.truncf %1 : vector<2x16x32xf32> to vector<2x16x32xbf16>
    %cst_7 = arith.constant dense<0.000000e+00> : vector<2x16x32xf32>
    %8 = tpu.matmul %6, %7, %cst_7 {dimension_numbers = #tpu.dot_dimension_numbers<[2], [1], [1], [2], [0, 0, 0, 1, 1, 2], [0], [0]>} : vector<2x16x16xbf16>, vector<2x16x32xbf16>, vector<2x16x32xf32> -> vector<2x16x32xf32>
    %9 = arith.mulf %1, %8 : vector<2x16x32xf32>
    %cst_8 = arith.constant dense<0.000000e+00> : vector<2x16xf32>
    %10 = vector.multi_reduction <add>, %9, %cst_8 [2] : vector<2x16x32xf32> to vector<2x16xf32>
    %11 = arith.addf %2, %3 : vector<2x16xf32>
    %12 = arith.mulf %5, %11 : vector<2x16xf32>
    %cst_9 = arith.constant 2.000000e+00 : f32
    %13 = vector.broadcast %cst_9 : f32 to vector<2x16xf32>
    %14 = arith.mulf %13, %10 : vector<2x16xf32>
    %15 = arith.subf %12, %14 : vector<2x16xf32>
    %cst_10 = arith.constant dense<0.000000e+00> : vector<2xf32>
    %16 = vector.multi_reduction <add>, %15, %cst_10 [1] : vector<2x16xf32> to vector<2xf32>
    %17 = vector.shape_cast %16 : vector<2xf32> to vector<2x1xf32>
    %18 = math.log %3 : vector<2x16xf32>
    %cst_11 = arith.constant dense<0.000000e+00> : vector<2xf32>
    %19 = vector.multi_reduction <add>, %18, %cst_11 [1] : vector<2x16xf32> to vector<2xf32>
    %20 = vector.shape_cast %19 : vector<2xf32> to vector<2x1xf32>
    %21 = arith.mulf %0, %0 : vector<2x16x16xf32>
    %cst_12 = arith.constant dense<0.000000e+00> : vector<2x16xf32>
    %22 = vector.multi_reduction <add>, %21, %cst_12 [2] : vector<2x16x16xf32> to vector<2x16xf32>
    %cst_13 = arith.constant dense<0.000000e+00> : vector<2xf32>
    %23 = vector.multi_reduction <add>, %22, %cst_13 [1] : vector<2x16xf32> to vector<2xf32>
    %24 = vector.shape_cast %23 : vector<2xf32> to vector<2x1xf32>
    %25 = math.sqrt %24 : vector<2x1xf32>
    %cst_14 = arith.constant 0.001953125 : f32
    %26 = vector.broadcast %cst_14 : f32 to vector<2x1xf32>
    %27 = arith.mulf %26, %17 : vector<2x1xf32>
    %cst_15 = arith.constant -6.250000e-02 : f32
    %28 = vector.broadcast %cst_15 : f32 to vector<2x1xf32>
    %29 = arith.mulf %28, %20 : vector<2x1xf32>
    %30 = arith.addf %27, %29 : vector<2x1xf32>
    %cst_16 = arith.constant 3.906250e-03 : f32
    %31 = vector.broadcast %cst_16 : f32 to vector<2x1xf32>
    %32 = arith.mulf %31, %25 : vector<2x1xf32>
    %33 = arith.addf %30, %32 : vector<2x1xf32>
    %c2_i32 = arith.constant 2 : i32
    %34 = arith.muli %arg0, %c2_i32 : i32
    %35 = tpu.iota {dimensions = array<i32: 0>} : vector<2x1xi32>
    %36 = vector.broadcast %34 : i32 to vector<2x1xi32>
    %37 = arith.addi %36, %35 : vector<2x1xi32>
    %c2_i32_17 = arith.constant 2 : i32
    %38 = vector.broadcast %c2_i32_17 : i32 to vector<2x1xi32>
    %39 = arith.cmpi slt, %37, %38 : vector<2x1xi32>
    %cst_18 = arith.constant 0.000000e+00 : f32
    %40 = vector.broadcast %cst_18 : f32 to vector<2x1xf32>
    %41 = arith.select %39, %33, %40 : vector<2x1xi1>, vector<2x1xf32>
    %42 = vector.shape_cast %41 : vector<2x1xf32> to vector<1x2x1xf32>
    %cst_19 = arith.constant dense<0.000000e+00> : vector<1xf32>
    %43 = vector.multi_reduction <add>, %42, %cst_19 [1, 2] : vector<1x2x1xf32> to vector<1xf32>
    %44 = vector.shape_cast %43 : vector<1xf32> to vector<1x1x1xf32>
    %45 = vector.extract %44[0, 0, 0] : f32 from vector<1x1x1xf32>
    %cst_20 = arith.constant 0.000000e+00 : f32
    %46 = vector.broadcast %cst_20 : f32 to vector<1x1x128xf32>
    %47 = vector.broadcast %45 : f32 to vector<1x1x128xf32>
    %48 = arith.addf %47, %46 : vector<1x1x128xf32>
    %c0_21 = arith.constant 0 : index
    %c0_22 = arith.constant 0 : index
    %c0_23 = arith.constant 0 : index
    %49 = vector.load %arg3[%c0_21, %c0_22, %c0_23] : memref<1x1x128xf32, #tpu.memory_space<vmem>>, vector<1x1x128xf32>
    tpu.vector_store %arg3[%c0_21, %c0_22, %c0_23], %48 {strides = array<i32>} : memref<1x1x128xf32, #tpu.memory_space<vmem>>, vector<1x1x128xf32>,
    return
  }
  func.func @transform_0(%arg0: i32) -> (i32, i32, i32) {
    %c0_i32 = arith.constant 0 : i32
    %c0_i32_0 = arith.constant 0 : i32
    %c0_i32_1 = arith.constant 0 : i32
    return %arg0, %c0_i32, %c0_i32_0 : i32, i32, i32
  }
  func.func @transform_1(%arg0: i32) -> (i32, i32, i32) {
    %c0_i32 = arith.constant 0 : i32
    %c0_i32_0 = arith.constant 0 : i32
    %c0_i32_1 = arith.constant 0 : i32
    return %arg0, %c0_i32, %c0_i32_0 : i32, i32, i32
  }
  func.func @transform_2(%arg0: i32) -> (i32, i32, i32) {
    %c0_i32 = arith.constant 0 : i32
    %c0_i32_0 = arith.constant 0 : i32
    %c0_i32_1 = arith.constant 0 : i32
    return %arg0, %c0_i32, %c0_i32_0 : i32, i32, i32
  }
}

</mosaic_0001>

<bundles_post_ra>
// kernel: tpu_custom_call.1
= control target key start
LH: loop header
LB: loop body
LE: loop exit
PB: predicated region body
PF: predicated region fallthrough
CT: control target
= control target key end

     0   :  { %7 = vsyncpa [#allocation3], 0  ;;  %s573_s0 = inlined_call_operand.hbm [shape: f32[2,16,16], index: 0, kind: input, shape index: {}]   ;;  %s574_s1 = inlined_call_operand.hbm [shape: f32[2,16,32], index: 1, kind: input, shape index: {}]   ;;  %s575_s2 = inlined_call_operand.hbm [shape: f32[1,1,128], index: 2, kind: output, shape index: {}]  }
   0x1   :  { %8 = vsyncpa [#allocation6], 0 }
   0x2   :  { %9 = vsyncpa [#allocation4], 0  ;;  %s14_s11 = sshll.u32 %s573_s0, 4  ;;  %s455_s12 = smov [#allocation2]   ;;  %s15_s11 = int_to_ptr.hbm [resolvable:$true] %s14_s11 }
   0x3   :  { %s16_s13 = sshll.u32 %s455_s12, 4  ;;  %s27_s16 = sshll.u32 %s574_s1, 4  ;;  %s17_s13 = int_to_ptr.vmem [resolvable:$true] %s16_s13  ;;  %s28_s16 = int_to_ptr.hbm [resolvable:$true] %s27_s16 }
   0x4   :  { %s456_s17 = smov 128   ;;  %s457_s18 = smov 8  }
   0x5   :  { %22 = dma.hbm_to_vmem [thread:$0]  %s15_s11, 512, %s17_s13, [#allocation3], %s456_s17, %s456_s17, %s457_s18  }
   0x6   :  { %s458_s19 = smov [#allocation5]  }
   0x7   :  { %s29_s20 = sshll.u32 %s458_s19, 4  ;;  %s30_s20 = int_to_ptr.vmem [resolvable:$true] %s29_s20 }
   0x8   :  { %35 = dma.hbm_to_vmem [thread:$0]  %s28_s16, 512, %s30_s20, [#allocation6], %s456_s17, %s456_s17, %s457_s18  }
   0x9   :  { %449 = dma.done.wait [#allocation3], 512  }
   0xa   :  { %450 = vsyncadd [#allocation3], 4294966784 }
   0xb   :  { %451 = dma.done.wait [#allocation6], 512  }
   0xc   :  { %452 = vsyncadd [#allocation6], 4294966784  ;;  %v179_v0 = vlaneseq  ;;  %vm53_vm0 = vcmask 130048   ;;  %v488_v3 = vld [vmem:[#allocation2 + $0x10] sm:$0xff]  ;;  %v490_v4 = vld [vmem:[#allocation2] sm:$0xff]  ;;  %vm84_vm1 = vcmask 261120  }
   0xd   :  { %v492_v5 = vld [vmem:[#allocation5] sm:$0xff]  ;;  %v60_v6 = vsel %vm53_vm0, %v488_v3, 0.0  ;;  %v99_v7 = vpack.c.bf16 %v488_v3, %v488_v3  ;;  %v54_v8 = vsel %vm53_vm0, %v490_v4, 0.0  ;;  %v97_v9 = vpack.c.bf16 %v490_v4, %v490_v4  ;;  %v502_v10 = vld [vmem:[#allocation5 + $0x8] sm:$0xff]  ;;  %v504_v11 = vld [vmem:[#allocation5 + $0x10] sm:$0xff]  ;;  %s343_s21 = sshll.u32 %s575_s2, 4  ;;  %s344_s21 = int_to_ptr.hbm [resolvable:$true] %s343_s21 }
   0xe   :  { %v483_v1 = vshrl.u32 %v179_v0, 7  ;;  %v506_v12 = vld [vmem:[#allocation5 + $0x18] sm:$0xff]  ;;  %61 = vadd.xlane.f32.xlu1 %v60_v6  ;;  %55 = vadd.xlane.f32.xlu0 %v54_v8  ;;  %v101_v13 = vpack.c.bf16 %v492_v5, %v492_v5  ;;  %v102_v14 = vpack.c.bf16 %v502_v10, %v502_v10  ;;  %v103_v15 = vpack.c.bf16 %v504_v11, %v504_v11  ;;  %v46_v21 = vld [vmem:[#allocation2 + $0x8] sm:$0xff]  ;;  %s460_s22 = smov [#allocation7]  }
   0xf   :  { %v48_v16 = vld [vmem:[#allocation2 + $0x18] sm:$0xff]  ;;  %v135_v17 = vunpack.c.l.b16 %v99_v7  ;;  %v107_v18 = vunpack.c.l.b16 %v97_v9  ;;  %v104_v19 = vpack.c.bf16 %v506_v12, %v506_v12  ;;  %v98_v29 = vpack.c.bf16 %v46_v21, %v46_v21  ;;  %s341_s23 = sshll.u32 %s460_s22, 4  ;;  %s342_s23 = int_to_ptr.vmem [resolvable:$true] %s341_s23 }
  0x10   :  { %364 = vset.pattern.permute.xlu2 %v483_v1  ;;  %366 = vset.pattern.permute.xlu0 %v483_v1  ;;  %v187_v2 = vadd.s32 8, %v483_v1  ;;  %v100_v20 = vpack.c.bf16 %v48_v16, %v48_v16  ;;  %v112_v22 = vunpack.c.l.b16 %v101_v13  ;;  %v113_v23 = vunpack.c.l.b16 %v102_v14 }
  0x11   :  { %v140_v24 = vunpack.c.l.b16 %v103_v15  ;;  %v63_v25 = vsel %vm53_vm0, %v48_v16, 0.0  ;;  %v141_v26 = vunpack.c.l.b16 %v104_v19  ;;  %v57_v31 = vsel %vm53_vm0, %v46_v21, 0.0 }
  0x12   :  { %367 = vset.pattern.permute.xlu1 %v187_v2  ;;  %v136_v27 = vunpack.c.l.b16 %v100_v20  ;;  %v73_v28 = vadd.f32 %v63_v25, %v60_v6  ;;  %v114_v30 = vpack.c.b16 %v113_v23, %v112_v22  ;;  %v108_v34 = vunpack.c.l.b16 %v98_v29 }
  0x13   :  { %v142_v32 = vpack.c.b16 %v141_v26, %v140_v24  ;;  %v66_v36 = vadd.f32 %v57_v31, %v54_v8  ;;  %v82_v49 = vmul.f32 %v504_v11, %v504_v11  ;;  %v81_v51 = vmul.f32 %v502_v10, %v502_v10 }
  0x14   :  { %v74_v33 = vrot.slane %v73_v28, 4  ;;  %126 = vmatpush.bf16.msra.mxu0 %v114_v30  ;;  %v137_v35 = vpack.c.b16 %v136_v27, %v135_v17  ;;  %v109_v37 = vpack.c.b16 %v108_v34, %v107_v18  ;;  %v80_v52 = vmul.f32 %v492_v5, %v492_v5 }
  0x15   :  { %154 = vmatpush.bf16.msra.mxu1 %v142_v32  ;;  %v67_v39 = vrot.slane %v66_v36, 4  ;;  %v91_v50 = vsel %vm84_vm1, %v82_v49, 0.0  ;;  %v88_v53 = vsel %vm84_vm1, %v81_v51, 0.0  ;;  %v268_v55 = vmul.f32 %v46_v21, %v46_v21 }
  0x16   :  { %64 = vadd.xlane.f32.xlu1 %v63_v25  ;;  %v75_v38 = vadd.f32 %v74_v33, %v73_v28  ;;  %58 = vadd.xlane.f32.xlu0 %v57_v31  ;;  %v85_v54 = vsel %vm84_vm1, %v80_v52, 0.0  ;;  %v83_v56 = vmul.f32 %v506_v12, %v506_v12  ;;  %v267_v59 = vmul.f32 %v490_v4, %v490_v4 }
  0x17   :  { %354 = vmatmul.msk.bf16.vlgmr.msra.gmra.mxu0 %vm53_vm0, %v109_v37  ;;  %v68_v40 = vadd.f32 %v67_v39, %v66_v36  ;;  %v274_v57 = vsel %vm53_vm0, %v268_v55, 0.0  ;;  %v270_v61 = vmul.f32 %v48_v16, %v48_v16  ;;  %v269_v17 = vmul.f32 %v488_v3, %v488_v3 }
  0x18   :  { %355 = vmatmul.msk.bf16.vlgmr.msra.gmra.mxu1 %vm53_vm0, %v137_v35  ;;  %v76_v41 = vrot.slane %v75_v38, 2  ;;  %v94_v58 = vsel %vm84_vm1, %v83_v56, 0.0  ;;  %v271_v60 = vsel %vm53_vm0, %v267_v59, 0.0  ;;  %v459_v21 = vmov 0  }
  0x19   :  { %v69_v42 = vrot.slane %v68_v40, 2  ;;  %v280_v62 = vsel %vm53_vm0, %v270_v61, 0.0  ;;  %v240_v52 = vand.u32 127, %v179_v0  ;;  %vm244_vm2 = vcmask 130112  }
  0x1a   :  { %v77_v44 = vadd.f32 %v76_v41, %v75_v38  ;;  %vm249_vm3 = vcmask 1041409   ;;  %vm252_vm4 = vcmask 123904   ;;  %vm320_vm7 = vcmp.lt.s32.totalorder %v483_v1, 2 }
  0x1b   :  { %v70_v43 = vadd.f32 %v69_v42, %v68_v40  ;;  %v242_v55 = vadd.s32 4294967288, %v240_v52  ;;  %vm322_vm8 = vcmask 1024  }
  0x1c   :  { %v78_v47 = vrot.slane %v77_v44, 1 }
  0x1d   :  { %v71_v45 = vrot.slane %v70_v43, 1 }
  0x1e   :  { %v523_v48 = vadd.f32 %v78_v47, %v77_v44 }
  0x1f   :  { %v520_v46 = vadd.f32 %v71_v45, %v70_v43 }
  0x21   :  { %183 = vperm.xlu2 %364, %v520_v46   ;;  %371 = vlog2.f32 %v520_v46 }
  0x22   :  { %373 = vlog2.f32 %v523_v48 }
  0x27   :  { %v372_v0 = vpop.eup %371 }
  0x29   :  { %365 = vset.pattern.permute.xlu2 %v187_v2 }
  0x2a   :  { %195 = vperm.xlu0 %366, %v523_v48  }
  0x2f   :  { %201 = vperm.xlu1 %367, %v523_v48  }
  0x31   :  { %189 = vperm.xlu2 %365, %v520_v46  }
  0x32   :  { %370 = vset.pattern.permute.xlu0 %v459_v21 }
  0x37   :  { %368 = vset.pattern.permute.xlu1 %v459_v21 }
  0x39   :  { %369 = vset.pattern.permute.xlu2 %v459_v21 }
  0x54   :  { %92 = vadd.xlane.f32.xlu0 %v91_v50 }
  0x59   :  { %89 = vadd.xlane.f32.xlu1 %v88_v53 }
  0x5a   :  { %86 = vadd.xlane.f32.xlu2 %v85_v54 }
  0x5c   :  { %281 = vadd.xlane.f32.xlu0 %v280_v62 }
  0x61   :  { %275 = vadd.xlane.f32.xlu1 %v274_v57 }
  0x62   :  { %95 = vadd.xlane.f32.xlu2 %v94_v58 }
  0x6a   :  { %272 = vadd.xlane.f32.xlu2 %v271_v60 }
  0x7b   :  { %v184_v18 = vpop.permute.xlu2 %183 }
  0x81   :  { %v62_v19 = vpop.xlane.xlu1 %61  ;;  %v56_v23 = vpop.xlane.xlu0 %55 }
  0x82   :  { %v207_v3 = vadd.f32 %v184_v18, %v56_v23 }
  0x89   :  { %v65_v22 = vpop.xlane.xlu1 %64  ;;  %v59_v25 = vpop.xlane.xlu0 %58 }
  0x94   :  { %v128_v63 = vpop.f32.mrf.mxu0 }
  0x95   :  { %v161_v2 = vmul.f32 %v128_v63, %v492_v5  ;;  %v156_v6 = vpop.f32.mrf.mxu1 }
  0x96   :  { %v163_v8 = vmul.f32 %v156_v6, %v504_v11  ;;  %v277_v11 = vsel %vm53_vm0, %v269_v17, 0.0  ;;  %v257_v6 = vmul.f32 0.6931472, %v372_v0 }
  0x97   :  { %v165_v7 = vsel %vm84_vm1, %v161_v2, 0.0  ;;  %v374_v2 = vpop.eup %373 }
  0x98   :  { %166 = vadd.xlane.f32.xlu2 %v165_v7  ;;  %v171_v4 = vsel %vm84_vm1, %v163_v8, 0.0  ;;  %v259_v7 = vmul.f32 0.6931472, %v374_v2 }
  0x9a   :  { %v262_v8 = vsel %vm249_vm3, %v259_v7, %v257_v6 }
  0x9c   :  { %v130_v14 = vpop.f32.mrf.mxu0  ;;  %v196_v28 = vpop.permute.xlu0 %195 }
  0x9d   :  { %v158_v9 = vpop.f32.mrf.mxu1  ;;  %v162_v16 = vmul.f32 %v130_v14, %v502_v10  ;;  %v209_v35 = vadd.f32 %v196_v28, %v62_v19 }
  0x9e   :  { %v164_v13 = vmul.f32 %v158_v9, %v506_v12  ;;  %v190_v12 = vpop.permute.xlu2 %189  ;;  %v264_v9 = vsel %vm252_vm4, %v262_v8, 0.0 }
  0x9f   :  { %v168_v5 = vsel %vm84_vm1, %v162_v16, 0.0  ;;  %v208_v45 = vadd.f32 %v190_v12, %v59_v25 }
  0xa0   :  { %v174_v15 = vsel %vm84_vm1, %v164_v13, 0.0  ;;  %172 = vadd.xlane.f32.xlu2 %v171_v4 }
  0xa1   :  { %175 = vadd.xlane.f32.xlu1 %v174_v15  ;;  %v202_v24 = vpop.permute.xlu1 %201 }
  0xa2   :  { %v210_v36 = vadd.f32 %v202_v24, %v65_v22 }
  0xa8   :  { %169 = vadd.xlane.f32.xlu2 %v168_v5 }
  0xb0   :  { %278 = vadd.xlane.f32.xlu2 %v277_v11 }
  0xc7   :  { %v93_v34 = vpop.xlane.xlu0 %92 }
  0xc8   :  { %v213_v38 = vmul.f32 %v209_v35, %v93_v34 }
  0xcc   :  { %v90_v27 = vpop.xlane.xlu1 %89 }
  0xcd   :  { %v87_v20 = vpop.xlane.xlu2 %86  ;;  %v212_v49 = vmul.f32 %v208_v45, %v90_v27 }
  0xce   :  { %v211_v30 = vmul.f32 %v207_v3, %v87_v20 }
  0xcf   :  { %v282_v53 = vpop.xlane.xlu0 %281 }
  0xd0   :  { %v291_v56 = vperm.slane %v282_v53, %v242_v55 }
  0xd4   :  { %v276_v31 = vpop.xlane.xlu1 %275 }
  0xd5   :  { %v96_v10 = vpop.xlane.xlu2 %95  ;;  %v288_v58 = vperm.slane %v276_v31, %v242_v55 }
  0xd6   :  { %v214_v41 = vmul.f32 %v210_v36, %v96_v10 }
  0xdd   :  { %v273_v26 = vpop.xlane.xlu2 %272 }
  0xde   :  { %v287_v59 = vperm.slane %v273_v26, %v240_v52 }
  0xe0   :  { %v289_v61 = vsel %vm244_vm2, %v288_v58, %v287_v59 }
 0x10b   :  { %v167_v29 = vpop.xlane.xlu2 %166 }
 0x10c   :  { %v215_v32 = vmul.f32 2.0, %v167_v29 }
 0x10e   :  { %v219_v33 = vsub.f32 %v211_v30, %v215_v32 }
 0x110   :  { %228 = vperm.xlu1 %368, %v219_v33  }
 0x113   :  { %v173_v37 = vpop.xlane.xlu2 %172 }
 0x114   :  { %v176_v39 = vpop.xlane.xlu1 %175  ;;  %v217_v40 = vmul.f32 2.0, %v173_v37 }
 0x115   :  { %v218_v42 = vmul.f32 2.0, %v176_v39 }
 0x116   :  { %v221_v43 = vsub.f32 %v213_v38, %v217_v40 }
 0x117   :  { %v222_v44 = vsub.f32 %v214_v41, %v218_v42 }
 0x118   :  { %234 = vperm.xlu0 %370, %v221_v43  }
 0x119   :  { %237 = vperm.xlu1 %368, %v222_v44  }
 0x11b   :  { %v170_v47 = vpop.xlane.xlu2 %169 }
 0x11c   :  { %v216_v50 = vmul.f32 2.0, %v170_v47 }
 0x11e   :  { %v220_v51 = vsub.f32 %v212_v49, %v216_v50 }
 0x120   :  { %231 = vperm.xlu2 %369, %v220_v51  }
 0x123   :  { %v279_v54 = vpop.xlane.xlu2 %278 }
 0x124   :  { %v290_v57 = vperm.slane %v279_v54, %v240_v52 }
 0x126   :  { %v292_v60 = vsel %vm244_vm2, %v291_v56, %v290_v57 }
 0x127   :  { %v293_v62 = vsel %vm249_vm3, %v292_v60, %v289_v61 }
 0x128   :  { %v295_v63 = vsel %vm252_vm4, %v293_v62, 0.0 }
 0x142   :  { %265 = vadd.xlane.f32.xlu0 %v264_v9 }
 0x149   :  { %296 = vadd.xlane.f32.xlu2 %v295_v63 }
 0x17a   :  { %v232_v4 = vpop.permute.xlu2 %231 }
 0x17b   :  { %v243_v17 = vperm.slane %v232_v4, %v242_v55 }
 0x182   :  { %v229_v13 = vpop.permute.xlu1 %228 }
 0x183   :  { %v241_v14 = vperm.slane %v229_v13, %v240_v52 }
 0x185   :  { %v245_v46 = vsel %vm244_vm2, %v243_v17, %v241_v14 }
 0x18a   :  { %v235_v15 = vpop.permute.xlu0 %234 }
 0x18b   :  { %v238_v16 = vpop.permute.xlu1 %237  ;;  %v246_v5 = vperm.slane %v235_v15, %v240_v52 }
 0x18c   :  { %v247_v11 = vperm.slane %v238_v16, %v242_v55 }
 0x18e   :  { %v248_v48 = vsel %vm244_vm2, %v247_v11, %v246_v5 }
 0x18f   :  { %v250_v18 = vsel %vm249_vm3, %v248_v48, %v245_v46 }
 0x190   :  { %v253_v12 = vsel %vm252_vm4, %v250_v18, 0.0 }
 0x191   :  { %254 = vadd.xlane.f32.xlu1 %v253_v12 }
 0x1b5   :  { %v266_v26 = vpop.xlane.xlu0 %265 }
 0x1b6   :  { %v311_v3 = vmul.f32 -0.0625, %v266_v26 }
 0x1bc   :  { %v297_v19 = vpop.xlane.xlu2 %296 }
 0x1bd   :  { %375 = vrsqrt.f32 %v297_v19  ;;  %vm305_vm5 = vcmp.eq.f32.partialorder %v297_v19, inf  ;;  %v308_v28 = vand.u32 2147483648, %v297_v19  ;;  %vm307_vm6 = vcmp.eq.f32.partialorder %v297_v19, 0.0 }
 0x1c3   :  { %v376_v20 = vpop.eup %375 }
 0x1c4   :  { %v299_v21 = vmul.f32 %v376_v20, %v297_v19 }
 0x1c6   :  { %v300_v22 = vmul.f32 %v376_v20, %v299_v21 }
 0x1c8   :  { %v301_v23 = vmul.f32 0.5, %v300_v22 }
 0x1ca   :  { %v302_v10 = vsub.f32 1.5, %v301_v23 }
 0x1cc   :  { %v303_v24 = vmul.f32 %v376_v20, %v302_v10 }
 0x1ce   :  { %v304_v25 = vmul.f32 %v303_v24, %v297_v19 }
 0x1d0   :  { %v306_v27 = vsel %vm305_vm5, %v297_v19, %v304_v25 }
 0x1d1   :  { %v309_v30 = vsel %vm307_vm6, %v308_v28, %v306_v27 }
 0x1d2   :  { %v313_v33 = vmul.f32 0.00390625, %v309_v30 }
 0x204   :  { %v255_v29 = vpop.xlane.xlu1 %254 }
 0x205   :  { %v310_v31 = vmul.f32 0.001953125, %v255_v29 }
 0x207   :  { %v312_v32 = vadd.f32 %v311_v3, %v310_v31 }
 0x209   :  { %v314_v34 = vadd.f32 %v313_v33, %v312_v32 }
 0x20b   :  { %v321_v35 = vsel %vm320_vm7, %v314_v34, 0.0 }
 0x20c   :  { %v323_v36 = vsel %vm322_vm8, %v321_v35, 0.0 }
 0x20d   :  { %324 = vadd.xlane.f32.xlu2 %v323_v36 }
 0x280   :  { %v325_v37 = vpop.xlane.xlu2 %324 }
 0x281   :  { %v326_v38 = vrot.slane %v325_v37, 4 }
 0x283   :  { %v327_v39 = vadd.f32 %v326_v38, %v325_v37 }
 0x285   :  { %v328_v40 = vrot.slane %v327_v39, 2 }
 0x287   :  { %v329_v41 = vadd.f32 %v328_v40, %v327_v39 }
 0x289   :  { %v330_v42 = vrot.slane %v329_v41, 1 }
 0x28b   :  { %v331_v43 = vadd.f32 %v330_v42, %v329_v41 }
 0x28d   :  { %356 = vpush %v331_v43 }
 0x2be   :  { %s357_s24 = spop %356 }
 0x2bf   :  { %v333_v1 = vstv %s357_s24 }
 0x2c0   :  { %335 = vst [vmem:[#allocation7] sm:$0x1] %v333_v1 }
 0x2c1   :  { %346 = dma.vmem_to_hbm [thread:$0]  %s342_s23, 16, %s344_s21, [#allocation4]  }
 0x2c2   :  { %453 = dma.done.wait [#allocation4], 16  }
 0x2c3   :  { %454 = vsyncadd [#allocation4], 4294967280 }
 0x2c4   :  { %351 = vsyncpa [#allocation3], 1 }
 0x2c5   :  { %352 = vsyncpa [#allocation6], 1 }
 0x2c6   :  { %353 = vsyncpa [#allocation4], 1 }

</bundles_post_ra>
